<compile_context>
chip_gen: v6e
topology: v6e:2x2x1
jax: 0.10.0
libtpu: 0.0.40
codegen_flags: <defaults>
</compile_context>

<pallas_src>
import functools

import jax
import jax.numpy as jnp
from jax.experimental import pallas as pl
from jax.experimental.pallas import tpu as pltpu


def _round_up(x, m):
    return ((x + m - 1) // m) * m


def init_params(key, num_inputs, num_actions, hidden_size, init_w=0.003):
    """Deterministic f32 init mirroring the PyTorch module:
    linear1/linear2: default nn.Linear init U(-1/sqrt(fan_in), 1/sqrt(fan_in));
    linear3: U(-init_w, init_w) for both weight and bias.
    Weights are stored as (in, out) so the math is y = x @ W + b."""
    k = jax.random.split(key, 6)
    lim1 = 1.0 / jnp.sqrt(num_inputs)
    lim2 = 1.0 / jnp.sqrt(hidden_size)
    return {
        "w1": jax.random.uniform(k[0], (num_inputs, hidden_size),
                                 jnp.float32, -lim1, lim1),
        "b1": jax.random.uniform(k[1], (hidden_size,), jnp.float32, -lim1, lim1),
        "w2": jax.random.uniform(k[2], (hidden_size, hidden_size),
                                 jnp.float32, -lim2, lim2),
        "b2": jax.random.uniform(k[3], (hidden_size,), jnp.float32, -lim2, lim2),
        "w3": jax.random.uniform(k[4], (hidden_size, num_actions),
                                 jnp.float32, -init_w, init_w),
        "b3": jax.random.uniform(k[5], (num_actions,), jnp.float32,
                                 -init_w, init_w),
    }


def prepare_params(params, compute_dtype=jnp.bfloat16):
    """Pad hidden/action dims to lane multiples (128), cast MXU weight operands
    to bf16 and pack the three biases into a single (3, P) f32 tensor.
    The contraction dim F (num_inputs) is intentionally left unpadded."""
    w1, w2, w3 = params["w1"], params["w2"], params["w3"]
    b1, b2, b3 = params["b1"], params["b2"], params["b3"]
    F, H = w1.shape
    A = w3.shape[1]
    Hp, Ap = _round_up(H, 128), _round_up(A, 128)
    P = max(Hp, Ap)

    def pad_w(w, shape):
        out = jnp.zeros(shape, dtype=compute_dtype)
        return out.at[: w.shape[0], : w.shape[1]].set(w.astype(compute_dtype))

    bias = jnp.zeros((3, P), jnp.float32)
    bias = bias.at[0, :H].set(b1)
    bias = bias.at[1, :H].set(b2)
    bias = bias.at[2, :A].set(b3)

    return {
        "w1": pad_w(w1, (F, Hp)),      # K dim left at F (unpadded)
        "w2": pad_w(w2, (Hp, Hp)),
        "w3": pad_w(w3, (Hp, Ap)),
        "bias": bias,
        "dims": (F, H, A, Hp, Ap, P),
    }


def _policy_mlp_kernel(x_ref, w1_ref, w2_ref, w3_ref, b_ref, o_ref, *, Hp, Ap):
    # x_ref: (tile, F) f32   weights: bf16 (padded N dims)   b_ref: (3, P) f32
    # Matmuls accumulate in f32 on the MXU; elementwise math stays f32
    # (VPU/EUP; f32 path is also the fast path on v5e).
    x = x_ref[...].astype(w1_ref.dtype)                              # cast at MXU
    h = jnp.dot(x, w1_ref[...], preferred_element_type=jnp.float32)
    h = jnp.maximum(h + b_ref[0:1, :Hp], 0.0)                        # ReLU
    h = jnp.dot(h.astype(w2_ref.dtype), w2_ref[...],
                preferred_element_type=jnp.float32)
    h = jnp.maximum(h + b_ref[1:2, :Hp], 0.0)                        # ReLU
    h = jnp.dot(h.astype(w3_ref.dtype), w3_ref[...],
                preferred_element_type=jnp.float32)
    o_ref[...] = jnp.tanh(h + b_ref[2:3, :Ap]).astype(o_ref.dtype)   # tanh, bf16


def policy_forward(state, prepped, tile_b=1024):
    """state: (B, num_inputs) float32.  prepped: output of prepare_params."""
    F, H, A, Hp, Ap, P = prepped["dims"]
    w1, w2, w3, bias = prepped["w1"], prepped["w2"], prepped["w3"], prepped["bias"]

    B = state.shape[0]
    # Bound batch padding to one bf16 sublane tile (16 rows), then pick the
    # largest 16-multiple tile <= tile_b that divides Bp exactly.
    Bp = _round_up(B, 16)
    tile = max(16, (min(tile_b, Bp) // 16) * 16)
    while Bp % tile:
        tile -= 16
    grid = Bp // tile

    # Pad only the batch rows; keep x f32 and the feature dim unpadded.
    x = state if Bp == B else jnp.pad(state, ((0, Bp - B), (0, 0)))

    kernel = functools.partial(_policy_mlp_kernel, Hp=Hp, Ap=Ap)

    welem = jnp.dtype(w1.dtype).itemsize
    cost = pl.CostEstimate(
        flops=2 * Bp * (F * Hp + Hp * Hp + Hp * Ap),
        transcendentals=Bp * Ap,                                   # tanh
        bytes_accessed=(Bp * F * 4                                 # x (f32)
                        + (F * Hp + Hp * Hp + Hp * Ap) * welem     # weights
                        + 3 * P * 4                                # biases
                        + Bp * Ap * 2),                            # out (bf16)
    )

    out = pl.pallas_call(
        kernel,
        out_shape=jax.ShapeDtypeStruct((Bp, Ap), jnp.bfloat16),
        grid_spec=pltpu.PrefetchScalarGridSpec(
            num_scalar_prefetch=0,
            grid=(grid,),
            in_specs=[
                pl.BlockSpec((tile, F), lambda i: (i, 0)),   # x: tiled over batch
                pl.BlockSpec((F, Hp), lambda i: (0, 0)),     # W1: VMEM-resident
                pl.BlockSpec((Hp, Hp), lambda i: (0, 0)),    # W2: VMEM-resident
                pl.BlockSpec((Hp, Ap), lambda i: (0, 0)),    # W3: VMEM-resident
                pl.BlockSpec((3, P), lambda i: (0, 0)),      # packed biases
            ],
            out_specs=pl.BlockSpec((tile, Ap), lambda i: (i, 0)),
        ),
        compiler_params=pltpu.CompilerParams(
            dimension_semantics=("parallel",),   # batch axis: shards across TCs
        ),
        cost_estimate=cost,
    )(x, w1, w2, w3, bias)

    # Slice real batch rows / action columns back out and return f32 like the
    # PyTorch module (cheap wrapper plumbing on a tiny array).
    return out[:B, :A].astype(jnp.float32)


if __name__ == "__main__":
    key = jax.random.PRNGKey(0)
    k_params, k_state = jax.random.split(key)

    batch = 8
    num_inputs = 16
    hidden_size = 32
    num_actions = 4

    params = init_params(k_params, num_inputs, num_actions, hidden_size)
    prepped = prepare_params(params)
    state = jax.random.normal(k_state, (batch, num_inputs), jnp.float32)

    out = policy_forward(state, prepped)
    out = jax.block_until_ready(out)

    # Pure-JAX f32 reference of the same math (unpadded params).
    h1 = jnp.maximum(state @ params["w1"] + params["b1"], 0.0)
    h2 = jnp.maximum(h1 @ params["w2"] + params["b2"], 0.0)
    ref = jnp.tanh(h2 @ params["w3"] + params["b3"])

    assert out.shape == (batch, num_actions)
    # Tolerance loosened because MXU operands are bf16 (f32 accumulation).
    assert jnp.max(jnp.abs(out - ref)) < 2e-2, jnp.max(jnp.abs(out - ref))

    # TODO(synk): get_action() is a host-side numpy wrapper around forward();
    # no kernel equivalent needed.
    print("KERNEL_OK")
</pallas_src>

<mosaic_0001>
module attributes {stable_mosaic.version = 11 : i64} {
  func.func @_policy_mlp_kernel(%arg0: i32, %arg1: memref<16x16xf32, #tpu.memory_space<vmem>>, %arg2: memref<16x128xbf16, #tpu.memory_space<vmem>>, %arg3: memref<128x128xbf16, #tpu.memory_space<vmem>>, %arg4: memref<128x128xbf16, #tpu.memory_space<vmem>>, %arg5: memref<3x128xf32, #tpu.memory_space<vmem>>, %arg6: memref<16x128xbf16, #tpu.memory_space<vmem>>) attributes {dimension_semantics = [#tpu.dimension_semantics<parallel>], iteration_bounds = array<i64: 1>, scalar_prefetch = 0 : i64, scratch_operands = 0 : i64, tpu.core_type = #tpu.core_type<tc>, window_params = [{transform_indices = @transform_0, window_bounds = array<i64: 16, 16>}, {pipeline_mode = #tpu.pipeline_mode<synchronous>, transform_indices = @transform_1, window_bounds = array<i64: 16, 128>}, {pipeline_mode = #tpu.pipeline_mode<synchronous>, transform_indices = @transform_2, window_bounds = array<i64: 128, 128>}, {pipeline_mode = #tpu.pipeline_mode<synchronous>, transform_indices = @transform_3, window_bounds = array<i64: 128, 128>}, {pipeline_mode = #tpu.pipeline_mode<synchronous>, transform_indices = @transform_4, window_bounds = array<i64: 3, 128>}, {transform_indices = @transform_5, window_bounds = array<i64: 16, 128>}]} {
    %c0 = arith.constant 0 : index
    %c0_0 = arith.constant 0 : index
    %0 = vector.load %arg1[%c0, %c0_0] : memref<16x16xf32, #tpu.memory_space<vmem>>, vector<16x16xf32>
    %1 = arith.truncf %0 : vector<16x16xf32> to vector<16x16xbf16>
    %c0_1 = arith.constant 0 : index
    %c0_2 = arith.constant 0 : index
    %2 = vector.load %arg2[%c0_1, %c0_2] : memref<16x128xbf16, #tpu.memory_space<vmem>>, vector<16x128xbf16>
    %cst = arith.constant dense<0.000000e+00> : vector<16x128xf32>
    %3 = tpu.matmul %1, %2, %cst {dimension_numbers = #tpu.dot_dimension_numbers<[1], [0], [0], [1], [0, 0, 1, 1], [], []>} : vector<16x16xbf16>, vector<16x128xbf16>, vector<16x128xf32> -> vector<16x128xf32>
    %c0_3 = arith.constant 0 : index
    %c0_4 = arith.constant 0 : index
    %4 = vector.load %arg5[%c0_3, %c0_4] : memref<3x128xf32, #tpu.memory_space<vmem>>, vector<1x128xf32>
    %5 = vector.broadcast %4 : vector<1x128xf32> to vector<16x128xf32>
    %6 = arith.addf %3, %5 : vector<16x128xf32>
    %cst_5 = arith.constant 0.000000e+00 : f32
    %7 = vector.broadcast %cst_5 : f32 to vector<16x128xf32>
    %8 = arith.maximumf %6, %7 : vector<16x128xf32>
    %9 = arith.truncf %8 : vector<16x128xf32> to vector<16x128xbf16>
    %c0_6 = arith.constant 0 : index
    %c0_7 = arith.constant 0 : index
    %10 = vector.load %arg3[%c0_6, %c0_7] : memref<128x128xbf16, #tpu.memory_space<vmem>>, vector<128x128xbf16>
    %cst_8 = arith.constant dense<0.000000e+00> : vector<16x128xf32>
    %11 = tpu.matmul %9, %10, %cst_8 {dimension_numbers = #tpu.dot_dimension_numbers<[1], [0], [0], [1], [0, 0, 1, 1], [], []>} : vector<16x128xbf16>, vector<128x128xbf16>, vector<16x128xf32> -> vector<16x128xf32>
    %c1 = arith.constant 1 : index
    %c0_9 = arith.constant 0 : index
    %12 = vector.load %arg5[%c1, %c0_9] : memref<3x128xf32, #tpu.memory_space<vmem>>, vector<1x128xf32>
    %13 = vector.broadcast %12 : vector<1x128xf32> to vector<16x128xf32>
    %14 = arith.addf %11, %13 : vector<16x128xf32>
    %cst_10 = arith.constant 0.000000e+00 : f32
    %15 = vector.broadcast %cst_10 : f32 to vector<16x128xf32>
    %16 = arith.maximumf %14, %15 : vector<16x128xf32>
    %17 = arith.truncf %16 : vector<16x128xf32> to vector<16x128xbf16>
    %c0_11 = arith.constant 0 : index
    %c0_12 = arith.constant 0 : index
    %18 = vector.load %arg4[%c0_11, %c0_12] : memref<128x128xbf16, #tpu.memory_space<vmem>>, vector<128x128xbf16>
    %cst_13 = arith.constant dense<0.000000e+00> : vector<16x128xf32>
    %19 = tpu.matmul %17, %18, %cst_13 {dimension_numbers = #tpu.dot_dimension_numbers<[1], [0], [0], [1], [0, 0, 1, 1], [], []>} : vector<16x128xbf16>, vector<128x128xbf16>, vector<16x128xf32> -> vector<16x128xf32>
    %c2 = arith.constant 2 : index
    %c0_14 = arith.constant 0 : index
    %20 = vector.load %arg5[%c2, %c0_14] : memref<3x128xf32, #tpu.memory_space<vmem>>, vector<1x128xf32>
    %21 = vector.broadcast %20 : vector<1x128xf32> to vector<16x128xf32>
    %22 = arith.addf %19, %21 : vector<16x128xf32>
    %23 = math.tanh %22 : vector<16x128xf32>
    %24 = arith.truncf %23 : vector<16x128xf32> to vector<16x128xbf16>
    %c0_15 = arith.constant 0 : index
    %c0_16 = arith.constant 0 : index
    %25 = vector.load %arg6[%c0_15, %c0_16] : memref<16x128xbf16, #tpu.memory_space<vmem>>, vector<16x128xbf16>
    tpu.vector_store %arg6[%c0_15, %c0_16], %24 {strides = array<i32>} : memref<16x128xbf16, #tpu.memory_space<vmem>>, vector<16x128xbf16>,
    return
  }
  func.func @transform_0(%arg0: i32) -> (i32, i32) {
    %c0_i32 = arith.constant 0 : i32
    %c0_i32_0 = arith.constant 0 : i32
    return %arg0, %c0_i32 : i32, i32
  }
  func.func @transform_1(%arg0: i32) -> (i32, i32) {
    %c0_i32 = arith.constant 0 : i32
    %c0_i32_0 = arith.constant 0 : i32
    %c0_i32_1 = arith.constant 0 : i32
    return %c0_i32, %c0_i32_0 : i32, i32
  }
  func.func @transform_2(%arg0: i32) -> (i32, i32) {
    %c0_i32 = arith.constant 0 : i32
    %c0_i32_0 = arith.constant 0 : i32
    %c0_i32_1 = arith.constant 0 : i32
    return %c0_i32, %c0_i32_0 : i32, i32
  }
  func.func @transform_3(%arg0: i32) -> (i32, i32) {
    %c0_i32 = arith.constant 0 : i32
    %c0_i32_0 = arith.constant 0 : i32
    %c0_i32_1 = arith.constant 0 : i32
    return %c0_i32, %c0_i32_0 : i32, i32
  }
  func.func @transform_4(%arg0: i32) -> (i32, i32) {
    %c0_i32 = arith.constant 0 : i32
    %c0_i32_0 = arith.constant 0 : i32
    %c0_i32_1 = arith.constant 0 : i32
    return %c0_i32, %c0_i32_0 : i32, i32
  }
  func.func @transform_5(%arg0: i32) -> (i32, i32) {
    %c0_i32 = arith.constant 0 : i32
    %c0_i32_0 = arith.constant 0 : i32
    return %arg0, %c0_i32 : i32, i32
  }
}

</mosaic_0001>

<bundles_post_ra>
// kernel: tpu_custom_call.1
= control target key start
LH: loop header
LB: loop body
LE: loop exit
PB: predicated region body
PF: predicated region fallthrough
CT: control target
= control target key end

     0   :  { %10 = vsyncpa [#allocation3], 0  ;;  %s731_s0 = inlined_call_operand.hbm [shape: f32[16,16], index: 0, kind: input, shape index: {}]   ;;  %s732_s1 = inlined_call_operand.hbm [shape: bf16[16,128], index: 1, kind: input, shape index: {}]   ;;  %s733_s2 = inlined_call_operand.hbm [shape: bf16[128,128], index: 2, kind: input, shape index: {}]   ;;  %s734_s3 = inlined_call_operand.hbm [shape: bf16[128,128], index: 3, kind: input, shape index: {}]   ;;  %s735_s4 = inlined_call_operand.vmem [shape: f32[3,128], index: 4, kind: input, shape index: {}]   ;;  %s736_s5 = inlined_call_operand.hbm [shape: bf16[16,128], index: 5, kind: output, shape index: {}]  }
   0x1   :  { %11 = vsyncpa [#allocation6], 0 }
   0x2   :  { %12 = vsyncpa [#allocation9], 0 }
   0x3   :  { %13 = vsyncpa [#allocation4], 0  ;;  %s631_s18 = smov [#allocation5]  }
   0x4   :  { %s31_s19 = sshll.u32 %s631_s18, 4  ;;  %s32_s19 = int_to_ptr.vmem [resolvable:$true] %s31_s19 }
   0x5   :  { %s531_s20 = scalar_lea.vmem %s32_s19, 128  ;;  %p536_p1 = scmp.lt.s32.totalorder %s32_s19, %s32_s19 }
   0x6   :  { %p532_p0 = scmp.ne.s32.totalorder %s32_s19, %s531_s20  ;;  %p537_p2 = scmp.lt.s32.totalorder %s531_s20, %s531_s20 }
   0x8   :  { %p538_p3 = por %p537_p2, %p536_p1 }
   0xa   :  { %p539_p4 = pnand %p538_p3, %p532_p0 }
   0xc   :  { %542 = shalt.err (!%p539_p4)
}
   0xd   :  { %s632_s21 = smov 64   ;;  %s633_s22 = smov 4  }
   0xe   :  { %37 = dma.hbm_to_vmem [thread:$0]  %s732_s1, 128, %s32_s19, [#allocation6], %s632_s21, %s632_s21, %s633_s22  }
   0xf   :  { %s634_s25 = smov [#allocation2]  }
  0x10   :  { %s19_s26 = sshll.u32 %s634_s25, 4  ;;  %s20_s26 = int_to_ptr.vmem [resolvable:$true] %s19_s26 }
  0x11   :  { %s551_s27 = scalar_lea.vmem %s20_s26, 256  ;;  %p556_p6 = scmp.lt.s32.totalorder %s20_s26, %s20_s26 }
  0x12   :  { %p552_p5 = scmp.ne.s32.totalorder %s20_s26, %s551_s27  ;;  %p557_p7 = scmp.lt.s32.totalorder %s551_s27, %s551_s27 }
  0x14   :  { %p558_p8 = por %p557_p7, %p556_p6 }
  0x16   :  { %p559_p9 = pnand %p558_p8, %p552_p5 }
  0x18   :  { %562 = shalt.err (!%p559_p9)
}
  0x19   :  { %s635_s28 = smov 128   ;;  %s636_s29 = smov 8  }
  0x1a   :  { %25 = dma.hbm_to_vmem [thread:$0]  %s731_s0, 256, %s20_s26, [#allocation3], %s635_s28, %s635_s28, %s636_s29  }
  0x1b   :  { %s637_s7 = smov [#allocation7]   ;;  %s638_s9 = smov [#allocation8]  }
  0x1c   :  { %s43_s8 = sshll.u32 %s637_s7, 4  ;;  %s55_s1 = sshll.u32 %s638_s9, 4  ;;  %s44_s8 = int_to_ptr.vmem [resolvable:$true] %s43_s8  ;;  %s56_s1 = int_to_ptr.vmem [resolvable:$true] %s55_s1 }
  0x1d   :  { %s571_s10 = scalar_lea.vmem %s44_s8, 1024  ;;  %p576_p11 = scmp.lt.s32.totalorder %s44_s8, %s44_s8 }
  0x1e   :  { %p572_p10 = scmp.ne.s32.totalorder %s44_s8, %s571_s10  ;;  %p577_p12 = scmp.lt.s32.totalorder %s571_s10, %s571_s10 }
  0x20   :  { %p578_p13 = por %p577_p12, %p576_p11 }
  0x22   :  { %p579_p0 = pnand %p578_p13, %p572_p10 }
  0x24   :  { %582 = shalt.err (!%p579_p0)
}
  0x25   :  { %49 = dma.hbm_to_vmem [thread:$0]  %s733_s2, 1024, %s44_s8, [#allocation6], %s632_s21, %s632_s21, %s633_s22  }
  0x26   :  { %s591_s0 = scalar_lea.vmem %s56_s1, 1024  ;;  %p596_p2 = scmp.lt.s32.totalorder %s56_s1, %s56_s1 }
  0x27   :  { %p592_p1 = scmp.ne.s32.totalorder %s56_s1, %s591_s0  ;;  %p597_p3 = scmp.lt.s32.totalorder %s591_s0, %s591_s0 }
  0x29   :  { %p598_p4 = por %p597_p3, %p596_p2 }
  0x2b   :  { %p599_p5 = pnand %p598_p4, %p592_p1 }
  0x2d   :  { %602 = shalt.err (!%p599_p5)
}
  0x2e   :  { %61 = dma.hbm_to_vmem [thread:$0]  %s734_s3, 1024, %s56_s1, [#allocation9], %s632_s21, %s632_s21, %s633_s22  }
  0x2f   :  { %623 = dma.done.wait [#allocation3], 256  }
  0x30   :  { %624 = vsyncadd [#allocation3], 4294967040 }
  0x31   :  { %625 = dma.done.wait [#allocation6], 1152  }
  0x32   :  { %626 = vsyncadd [#allocation6], 4294966144 }
  0x33   :  { %627 = dma.done.wait [#allocation9], 1024  }
  0x34   :  { %628 = vsyncadd [#allocation9], 4294966272  ;;  %v639_v0 = vmov 0.0   ;;  %vm640_vm0 = vmmov 0   ;;  %v502_v1 = vld [vmem:[#allocation5] sm:$0xff]   ;;  %v77_v2 = vld [vmem:[#allocation2] sm:$0xff] }
  0x35   :  { %445 = vmatprep.subr.bf16.mxu0 %v639_v0  ;;  %447 = vmatprep.mubr.msk.bf16.mxu0 %vm640_vm0, %v639_v0  ;;  %v78_v3 = vld [vmem:[#allocation2 + $0x8] sm:$0xff]  ;;  %vm93_vm1 = vcmask 130048   ;;  %v503_v5 = vld [vmem:[#allocation7 + $0x38] sm:$0xff]   ;;  %v505_v7 = vld [vmem:[#allocation7 + $0x28] sm:$0xff]   ;;  %s641_s19 = smov [#allocation10]  }
  0x36   :  { %451 = vmatprep.subr.bf16.mxu1 %v639_v0  ;;  %467 = vmatprep.mubr.msk.bf16.mxu1 %vm640_vm0, %v639_v0  ;;  %v79_v4 = vpack.c.bf16 %v78_v3, %v77_v2  ;;  %v504_v6 = vld [vmem:[#allocation7 + $0x30] sm:$0xff]   ;;  %v506_v8 = vld [vmem:[#allocation7 + $0x20] sm:$0xff]   ;;  %v507_v9 = vld [vmem:[#allocation7 + $0x18] sm:$0xff]   ;;  %s381_s20 = sshll.u32 %s641_s19, 4  ;;  %s382_s20 = int_to_ptr.vmem [resolvable:$true] %s381_s20 }
  0x37   :  { %446 = vmatpush3.bf16.msra.mxu0 %v502_v1  ;;  %452 = vmatpush3.bf16.msra.mxu1 %v503_v5  ;;  %v508_v10 = vld [vmem:[#allocation7 + $0x10] sm:$0xff]   ;;  %v509_v11 = vld [vmem:[#allocation7 + $0x8] sm:$0xff]   ;;  %v510_v12 = vld [vmem:[#allocation7] sm:$0xff]   ;;  %s603_s23 = scalar_lea.vmem %s382_s20, 128  ;;  %p608_p7 = scmp.lt.s32.totalorder %s382_s20, %s382_s20 }
  0x38   :  { %471 = vmatprep.subr.bf16.mxu0 %v639_v0  ;;  %453 = vmatprep.subr.bf16.mxu1 %v639_v0  ;;  %v511_v13 = vld [vmem:[#allocation8 + $0x38] sm:$0xff]   ;;  %v512_v14 = vld [vmem:[#allocation8 + $0x30] sm:$0xff]   ;;  %v513_v15 = vld [vmem:[#allocation8 + $0x28] sm:$0xff]   ;;  %p604_p6 = scmp.ne.s32.totalorder %s382_s20, %s603_s23  ;;  %p609_p8 = scmp.lt.s32.totalorder %s603_s23, %s603_s23 }
  0x39   :  { %v514_v16 = vld [vmem:[#allocation8 + $0x20] sm:$0xff]   ;;  %v515_v17 = vld [vmem:[#allocation8 + $0x18] sm:$0xff]   ;;  %v395_v18 = vld [vmem:[%s735_s4] ss:$0 sm:$0xff] }
  0x3a   :  { %448 = vmatmul.mubr.msk.bf16.vlgmr.msra.gmra.mxu0 %vm93_vm1, %v79_v4  ;;  %v516_v28 = vld [vmem:[#allocation8 + $0x10] sm:$0xff]   ;;  %v517_v29 = vld [vmem:[#allocation8 + $0x8] sm:$0xff]   ;;  %v518_v30 = vld [vmem:[#allocation8] sm:$0xff]   ;;  %p610_p9 = por %p609_p8, %p608_p7 }
  0x3b   :  { %487 = vmatprep.mubr.msk.bf16.mxu0 %vm640_vm0, %v639_v0  ;;  %454 = vmatpush3.bf16.msra.mxu1 %v504_v6  ;;  %v398_v31 = vld [vmem:[%s735_s4 + $0x1] ss:$0 sm:$0xff]  ;;  %v407_v41 = vld [vmem:[%s735_s4 + $0x2] ss:$0 sm:$0xff] }
  0x3c   :  { %455 = vmatprep.subr.bf16.mxu1 %v639_v0  ;;  %472 = vmatpush3.bf16.msra.mxu0 %v511_v13  ;;  %p611_p10 = pnand %p610_p9, %p604_p6 }
  0x3d   :  { %473 = vmatprep.subr.bf16.mxu0 %v639_v0 }
  0x3f   :  { %456 = vmatpush3.bf16.msra.mxu1 %v505_v7 }
  0x40   :  { %457 = vmatprep.subr.bf16.mxu1 %v639_v0  ;;  %474 = vmatpush3.bf16.msra.mxu0 %v512_v14 }
  0x41   :  { %475 = vmatprep.subr.bf16.mxu0 %v639_v0 }
  0x43   :  { %458 = vmatpush3.bf16.msra.mxu1 %v506_v8 }
  0x44   :  { %459 = vmatprep.subr.bf16.mxu1 %v639_v0  ;;  %476 = vmatpush3.bf16.msra.mxu0 %v513_v15 }
  0x45   :  { %477 = vmatprep.subr.bf16.mxu0 %v639_v0 }
  0x47   :  { %460 = vmatpush3.bf16.msra.mxu1 %v507_v9 }
  0x48   :  { %461 = vmatprep.subr.bf16.mxu1 %v639_v0  ;;  %478 = vmatpush3.bf16.msra.mxu0 %v514_v16 }
  0x49   :  { %479 = vmatprep.subr.bf16.mxu0 %v639_v0 }
  0x4b   :  { %462 = vmatpush3.bf16.msra.mxu1 %v508_v10 }
  0x4c   :  { %463 = vmatprep.subr.bf16.mxu1 %v639_v0  ;;  %480 = vmatpush3.bf16.msra.mxu0 %v515_v17 }
  0x4d   :  { %481 = vmatprep.subr.bf16.mxu0 %v639_v0 }
  0x4f   :  { %464 = vmatpush3.bf16.msra.mxu1 %v509_v11 }
  0x50   :  { %465 = vmatprep.subr.bf16.mxu1 %v639_v0  ;;  %482 = vmatpush3.bf16.msra.mxu0 %v516_v28 }
  0x51   :  { %483 = vmatprep.subr.bf16.mxu0 %v639_v0 }
  0x53   :  { %466 = vmatpush3.bf16.msra.mxu1 %v510_v12 }
  0x54   :  { %484 = vmatpush3.bf16.msra.mxu0 %v517_v29 }
  0x55   :  { %485 = vmatprep.subr.bf16.mxu0 %v639_v0 }
  0x58   :  { %486 = vmatpush3.bf16.msra.mxu0 %v518_v30 }
  0xfa   :  { %v131_v19 = vpop.f32.mrf.mxu0 }
  0xfb   :  { %v132_v21 = vadd.f32 %v395_v18, %v131_v19 }
  0xfc   :  { %v449_v20 = vpop.f32.mrf.mxu0 }
  0xfd   :  { %v138_v25 = vmax.f32 %v132_v21, 0.0 }
  0xfe   :  { %v134_v22 = vpop.f32.mrf.mxu0 }
  0xff   :  { %v135_v23 = vadd.f32 %v395_v18, %v134_v22 }
 0x100   :  { %v450_v24 = vpop.f32.mrf.mxu0 }
 0x101   :  { %v139_v26 = vmax.f32 %v135_v23, 0.0 }
 0x103   :  { %v140_v27 = vpack.c.bf16 %v139_v26, %v138_v25 }
 0x105   :  { %468 = vmatmul.mubr.bf16.vlgmr.msra.gmra.mxu1 %v140_v27 }
 0x1c5   :  { %v244_v32 = vpop.f32.mrf.mxu1 }
 0x1c6   :  { %v245_v34 = vadd.f32 %v398_v31, %v244_v32 }
 0x1c7   :  { %v469_v33 = vpop.f32.mrf.mxu1 }
 0x1c8   :  { %v251_v38 = vmax.f32 %v245_v34, 0.0 }
 0x1c9   :  { %v247_v35 = vpop.f32.mrf.mxu1 }
 0x1ca   :  { %v248_v36 = vadd.f32 %v398_v31, %v247_v35 }
 0x1cb   :  { %v470_v37 = vpop.f32.mrf.mxu1 }
 0x1cc   :  { %v252_v39 = vmax.f32 %v248_v36, 0.0 }
 0x1ce   :  { %v253_v40 = vpack.c.bf16 %v252_v39, %v251_v38 }
 0x1d0   :  { %488 = vmatmul.mubr.bf16.vlgmr.msra.gmra.mxu0 %v253_v40 }
 0x290   :  { %v357_v42 = vpop.f32.mrf.mxu0 }
 0x291   :  { %v358_v43 = vadd.f32 %v407_v41, %v357_v42 }
 0x292   :  { %v489_v44 = vpop.f32.mrf.mxu0 }
 0x293   :  { %519 = vtanh.f32 %v358_v43 }
 0x294   :  { %v360_v45 = vpop.f32.mrf.mxu0 }
 0x295   :  { %v361_v46 = vadd.f32 %v407_v41, %v360_v45 }
 0x296   :  { %v490_v47 = vpop.f32.mrf.mxu0 }
 0x297   :  { %521 = vtanh.f32 %v361_v46 }
 0x2a0   :  { %v520_v48 = vpop.eup %519 }
 0x2a4   :  { %v522_v49 = vpop.eup %521 }
 0x2a5   :  { %v423_v50 = vpack.c.bf16 %v522_v49, %v520_v48 }
 0x2a7   :  { %424 = vst [vmem:[#allocation10] sm:$0xff] %v423_v50  }
 0x2a8   :  { %614 = shalt.err (!%p611_p10)
}
 0x2a9   :  { %387 = dma.vmem_to_hbm [thread:$0]  %s382_s20, 128, %s736_s5, [#allocation4], %s632_s21, %s632_s21, %s633_s22  }
 0x2aa   :  { %629 = dma.done.wait [#allocation4], 128  }
 0x2ab   :  { %630 = vsyncadd [#allocation4], 4294967168 }
 0x2ac   :  { %391 = vsyncpa [#allocation3], 1 }
 0x2ad   :  { %392 = vsyncpa [#allocation6], 1 }
 0x2ae   :  { %393 = vsyncpa [#allocation9], 1 }
 0x2af   :  { %394 = vsyncpa [#allocation4], 1 }

</bundles_post_ra>
